<compile_context>
chip_gen: v6e
topology: v6e:2x2x1
jax: 0.10.0
libtpu: 0.0.40
codegen_flags: <defaults>
</compile_context>

<pallas_src>
import functools

import jax
import jax.numpy as jnp
from jax.experimental import pallas as pl
from jax.experimental.pallas import tpu as pltpu


def avwgcn2_kernel(e_tile_ref, e_t_ref, x2_ref, wflat_ref, bpool_ref, o_ref,
                   *, cin, cout, batch, tile_n, mxu_dtype):
    # e_tile_ref: (TN, D)        node embeddings for this row tile
    # e_t_ref:    (D, N)         node embeddings transposed (wrapper-side)
    # x2_ref:     (N, B*Cin)     node-major activations, column index = b*Cin + i
    # wflat_ref:  (D, Cin*Cout)  weights_pool reshaped wrapper-side (lane-dense)
    # bpool_ref:  (D, Cout)
    # o_ref:      (TN, B*Cout)   lane-dense node-major output slab for this tile
    r = pl.program_id(0)

    Et = e_tile_ref[...].astype(jnp.float32)                        # (TN, D)

    # ---- batch-invariant work (computed once per node tile, shared by all B) ----
    # supports rows (WITHOUT the identity, folded in later):
    #   softmax(relu(Et @ E^T), axis=1)
    logits = jnp.dot(Et.astype(mxu_dtype),
                     e_t_ref[...].astype(mxu_dtype),
                     preferred_element_type=jnp.float32)            # (TN, N)
    logits = jnp.maximum(logits, 0.0)
    m = jnp.max(logits, axis=1, keepdims=True)
    p = jnp.exp(logits - m)
    denom = jnp.sum(p, axis=1, keepdims=True)
    # exact reciprocal: softmax runs once per tile (cold path) and the test
    # tolerance is 1e-4, so approx=True buys nothing here.
    supports = p * pl.reciprocal(denom, approx=False)               # (TN, N)

    # per-node weights / bias for this tile: single fused, lane-filling matmuls
    W = jnp.dot(Et, wflat_ref[...].astype(jnp.float32),
                preferred_element_type=jnp.float32)                 # (TN, Cin*Cout)
    bias = jnp.dot(Et, bpool_ref[...].astype(jnp.float32),
                   preferred_element_type=jnp.float32)              # (TN, Cout)

    # ---- all batch elements at once: one MXU matmul (TN,N) @ (N, B*Cin) ----
    xg = jnp.dot(supports.astype(mxu_dtype),
                 x2_ref[...].astype(mxu_dtype),
                 preferred_element_type=jnp.float32)                # (TN, B*Cin)

    # fold the identity term of supports: (I + S) X  ==  S X + X[tile rows]
    row0 = pl.multiple_of(r * tile_n, tile_n)
    xg = xg + x2_ref[pl.ds(row0, tile_n), :].astype(jnp.float32)    # (TN, B*Cin)

    # ---- per-node contraction over Cin: VPU FMAs on static slices, Cin outer /
    # batch inner so each (TN, Cout) W slice is reused across all batches.
    # Accumulate into a lane-dense (TN, B*Cout) slab, single unmasked store. ----
    accs = [bias for _ in range(batch)]                             # each (TN, Cout)
    for i in range(cin):
        w_i = W[:, i * cout:(i + 1) * cout]                         # (TN, Cout)
        for b in range(batch):
            c = b * cin + i
            accs[b] = accs[b] + xg[:, c:c + 1] * w_i
    acc = jnp.concatenate(accs, axis=1)                             # (TN, B*Cout)
    o_ref[...] = acc.astype(o_ref.dtype)


def _pick_node_tile(n):
    """Largest MXU-friendly row tile dividing n that still leaves >=2 grid
    steps (keeps both v7x TensorCores busy); fall back to TN = n."""
    for tn in (256, 128, 64, 32, 16, 8):
        if n % tn == 0 and n // tn >= 2:
            return tn
    return n


def avwgcn2_forward(x, node_embeddings, weights_pool, bias_pool,
                    *, mxu_dtype=jnp.float32):
    """x: (B, N, Cin) f32; node_embeddings: (N, D); weights_pool: (D, Cin, Cout);
    bias_pool: (D, Cout). Returns (B, N, Cout) f32.

    mxu_dtype: set to jnp.bfloat16 at realistic N for MXU throughput
    (accumulation stays f32); keep f32 for tight tolerances / tiny shapes."""
    B, N, Cin = x.shape
    D, Cin_w, Cout = weights_pool.shape
    assert Cin_w == Cin and node_embeddings.shape == (N, D)
    assert bias_pool.shape == (D, Cout)

    # Wrapper-side layout plumbing (kept out of the kernel):
    # TODO(synk): accepting/producing node-major activations upstream would
    # remove both of these HBM-round-trip transposes from the wrapper.
    x2 = jnp.transpose(x, (1, 0, 2)).reshape(N, B * Cin)            # (N, B*Cin)
    e_t = node_embeddings.T                                         # (D, N)
    wpool_flat = weights_pool.reshape(D, Cin * Cout)                # (D, Cin*Cout)

    TN = _pick_node_tile(N)
    grid = (N // TN,)

    kernel = functools.partial(
        avwgcn2_kernel,
        cin=Cin, cout=Cout, batch=B, tile_n=TN, mxu_dtype=mxu_dtype,
    )

    grid_spec = pltpu.PrefetchScalarGridSpec(
        num_scalar_prefetch=0,
        grid=grid,
        in_specs=[
            pl.BlockSpec((TN, D), lambda r: (r, 0)),                # E rows of this tile
            pl.BlockSpec((D, N), lambda r: (0, 0)),                 # E^T (full)
            pl.BlockSpec((N, B * Cin), lambda r: (0, 0)),           # node-major x slab
            pl.BlockSpec((D, Cin * Cout), lambda r: (0, 0)),        # fused weights_pool
            pl.BlockSpec((D, Cout), lambda r: (0, 0)),              # bias_pool
        ],
        # lane-dense node-major output: one (TN, B*Cout) unmasked store per tile
        out_specs=pl.BlockSpec((TN, B * Cout), lambda r: (r, 0)),
    )

    out2 = pl.pallas_call(
        kernel,
        out_shape=jax.ShapeDtypeStruct((N, B * Cout), jnp.float32),
        grid_spec=grid_spec,
        compiler_params=pltpu.CompilerParams(
            dimension_semantics=("parallel",),
            vmem_limit_bytes=64 * 1024 * 1024,
        ),
    )(node_embeddings, e_t, x2, wpool_flat, bias_pool)

    # (N, B*Cout) node-major slab -> (B, N, Cout)
    return jnp.transpose(out2.reshape(N, B, Cout), (1, 0, 2))


def avwgcn2_reference(x, node_embeddings, weights_pool, bias_pool):
    N = node_embeddings.shape[0]
    logits = jnp.maximum(node_embeddings @ node_embeddings.T, 0.0)
    supports = jax.nn.softmax(logits, axis=1)
    supports = jnp.eye(N, dtype=supports.dtype) + supports
    weights = jnp.einsum('nd,dio->nio', node_embeddings, weights_pool)
    bias = node_embeddings @ bias_pool
    x_g = jnp.einsum('nm,bmc->bnc', supports, x)
    return jnp.einsum('bni,nio->bno', x_g, weights) + bias


if __name__ == "__main__":
    # Small shapes consistent with the module.
    B, N = 2, 16           # batch, num nodes
    dim_in, dim_out = 4, 32
    embed_dim = 8
    # cheb_k / adj are unused in forward(); omitted on purpose.

    key = jax.random.PRNGKey(0)
    kx, ke, kw, kb = jax.random.split(key, 4)
    x = jax.random.normal(kx, (B, N, dim_in), dtype=jnp.float32)
    node_embeddings = jax.random.normal(ke, (N, embed_dim), dtype=jnp.float32)
    weights_pool = 0.1 * jax.random.normal(kw, (embed_dim, dim_in, dim_out),
                                           dtype=jnp.float32)
    bias_pool = 0.1 * jax.random.normal(kb, (embed_dim, dim_out), dtype=jnp.float32)

    out = avwgcn2_forward(x, node_embeddings, weights_pool, bias_pool)
    out = jax.block_until_ready(out)

    ref = avwgcn2_reference(x, node_embeddings, weights_pool, bias_pool)
    assert out.shape == (B, N, dim_out)
    assert jnp.allclose(out, ref, atol=1e-4, rtol=1e-4), "mismatch vs reference"

    print("KERNEL_OK")
</pallas_src>

<mosaic_0001>
module attributes {stable_mosaic.version = 11 : i64} {
  func.func @avwgcn2_kernel(%arg0: i32, %arg1: memref<8x8xf32, #tpu.memory_space<vmem>>, %arg2: memref<8x16xf32, #tpu.memory_space<vmem>>, %arg3: memref<16x8xf32, #tpu.memory_space<vmem>>, %arg4: memref<8x128xf32, #tpu.memory_space<vmem>>, %arg5: memref<8x32xf32, #tpu.memory_space<vmem>>, %arg6: memref<8x64xf32, #tpu.memory_space<vmem>>) attributes {dimension_semantics = [#tpu.dimension_semantics<parallel>], iteration_bounds = array<i64: 2>, scalar_prefetch = 0 : i64, scratch_operands = 0 : i64, tpu.core_type = #tpu.core_type<tc>, window_params = [{transform_indices = @transform_0, window_bounds = array<i64: 8, 8>}, {pipeline_mode = #tpu.pipeline_mode<synchronous>, transform_indices = @transform_1, window_bounds = array<i64: 8, 16>}, {pipeline_mode = #tpu.pipeline_mode<synchronous>, transform_indices = @transform_2, window_bounds = array<i64: 16, 8>}, {pipeline_mode = #tpu.pipeline_mode<synchronous>, transform_indices = @transform_3, window_bounds = array<i64: 8, 128>}, {pipeline_mode = #tpu.pipeline_mode<synchronous>, transform_indices = @transform_4, window_bounds = array<i64: 8, 32>}, {transform_indices = @transform_5, window_bounds = array<i64: 8, 64>}]} {
    %c0 = arith.constant 0 : index
    %c0_0 = arith.constant 0 : index
    %0 = vector.load %arg1[%c0, %c0_0] : memref<8x8xf32, #tpu.memory_space<vmem>>, vector<8x8xf32>
    %c0_1 = arith.constant 0 : index
    %c0_2 = arith.constant 0 : index
    %1 = vector.load %arg2[%c0_1, %c0_2] : memref<8x16xf32, #tpu.memory_space<vmem>>, vector<8x16xf32>
    %cst = arith.constant dense<0.000000e+00> : vector<8x16xf32>
    %2 = tpu.matmul %0, %1, %cst {dimension_numbers = #tpu.dot_dimension_numbers<[1], [0], [0], [1], [0, 0, 1, 1], [], []>} : vector<8x8xf32>, vector<8x16xf32>, vector<8x16xf32> -> vector<8x16xf32>
    %cst_3 = arith.constant 0.000000e+00 : f32
    %3 = vector.broadcast %cst_3 : f32 to vector<8x16xf32>
    %4 = arith.maximumf %2, %3 : vector<8x16xf32>
    %cst_4 = arith.constant dense<0xFF800000> : vector<8xf32>
    %5 = vector.multi_reduction <maximumf>, %4, %cst_4 [1] : vector<8x16xf32> to vector<8xf32>
    %6 = vector.shape_cast %5 : vector<8xf32> to vector<8x1xf32>
    %7 = vector.broadcast %6 : vector<8x1xf32> to vector<8x16xf32>
    %8 = arith.subf %4, %7 : vector<8x16xf32>
    %9 = math.exp %8 : vector<8x16xf32>
    %cst_5 = arith.constant dense<0.000000e+00> : vector<8xf32>
    %10 = vector.multi_reduction <add>, %9, %cst_5 [1] : vector<8x16xf32> to vector<8xf32>
    %11 = vector.shape_cast %10 : vector<8xf32> to vector<8x1xf32>
    %12 = tpu.reciprocal %11 : vector<8x1xf32> -> vector<8x1xf32>
    %13 = vector.broadcast %12 : vector<8x1xf32> to vector<8x16xf32>
    %14 = arith.mulf %9, %13 : vector<8x16xf32>
    %c0_6 = arith.constant 0 : index
    %c0_7 = arith.constant 0 : index
    %15 = vector.load %arg4[%c0_6, %c0_7] : memref<8x128xf32, #tpu.memory_space<vmem>>, vector<8x128xf32>
    %cst_8 = arith.constant dense<0.000000e+00> : vector<8x128xf32>
    %16 = tpu.matmul %0, %15, %cst_8 {dimension_numbers = #tpu.dot_dimension_numbers<[1], [0], [0], [1], [0, 0, 1, 1], [], []>} : vector<8x8xf32>, vector<8x128xf32>, vector<8x128xf32> -> vector<8x128xf32>
    %c0_9 = arith.constant 0 : index
    %c0_10 = arith.constant 0 : index
    %17 = vector.load %arg5[%c0_9, %c0_10] : memref<8x32xf32, #tpu.memory_space<vmem>>, vector<8x32xf32>
    %cst_11 = arith.constant dense<0.000000e+00> : vector<8x32xf32>
    %18 = tpu.matmul %0, %17, %cst_11 {dimension_numbers = #tpu.dot_dimension_numbers<[1], [0], [0], [1], [0, 0, 1, 1], [], []>} : vector<8x8xf32>, vector<8x32xf32>, vector<8x32xf32> -> vector<8x32xf32>
    %c0_12 = arith.constant 0 : index
    %c0_13 = arith.constant 0 : index
    %19 = vector.load %arg3[%c0_12, %c0_13] : memref<16x8xf32, #tpu.memory_space<vmem>>, vector<16x8xf32>
    %cst_14 = arith.constant dense<0.000000e+00> : vector<8x8xf32>
    %20 = tpu.matmul %14, %19, %cst_14 {dimension_numbers = #tpu.dot_dimension_numbers<[1], [0], [0], [1], [0, 0, 1, 1], [], []>} : vector<8x16xf32>, vector<16x8xf32>, vector<8x8xf32> -> vector<8x8xf32>
    %c8_i32 = arith.constant 8 : i32
    %21 = arith.muli %arg0, %c8_i32 : i32
    %22 = tpu.assume_multiple %21, 8 : i32
    %23 = arith.index_cast %22 : i32 to index
    %c0_15 = arith.constant 0 : index
    %24 = vector.load %arg3[%23, %c0_15] : memref<16x8xf32, #tpu.memory_space<vmem>>, vector<8x8xf32>
    %25 = arith.addf %20, %24 : vector<8x8xf32>
    %26 = vector.extract_strided_slice %16 {offsets = [0, 0], sizes = [8, 32], strides = [1, 1]} : vector<8x128xf32> to vector<8x32xf32>
    %27 = vector.extract_strided_slice %25 {offsets = [0, 0], sizes = [8, 1], strides = [1, 1]} : vector<8x8xf32> to vector<8x1xf32>
    %28 = vector.broadcast %27 : vector<8x1xf32> to vector<8x32xf32>
    %29 = arith.mulf %28, %26 : vector<8x32xf32>
    %30 = arith.addf %18, %29 : vector<8x32xf32>
    %31 = vector.extract_strided_slice %25 {offsets = [0, 4], sizes = [8, 1], strides = [1, 1]} : vector<8x8xf32> to vector<8x1xf32>
    %32 = vector.broadcast %31 : vector<8x1xf32> to vector<8x32xf32>
    %33 = arith.mulf %32, %26 : vector<8x32xf32>
    %34 = arith.addf %18, %33 : vector<8x32xf32>
    %35 = vector.extract_strided_slice %16 {offsets = [0, 32], sizes = [8, 32], strides = [1, 1]} : vector<8x128xf32> to vector<8x32xf32>
    %36 = vector.extract_strided_slice %25 {offsets = [0, 1], sizes = [8, 1], strides = [1, 1]} : vector<8x8xf32> to vector<8x1xf32>
    %37 = vector.broadcast %36 : vector<8x1xf32> to vector<8x32xf32>
    %38 = arith.mulf %37, %35 : vector<8x32xf32>
    %39 = arith.addf %30, %38 : vector<8x32xf32>
    %40 = vector.extract_strided_slice %25 {offsets = [0, 5], sizes = [8, 1], strides = [1, 1]} : vector<8x8xf32> to vector<8x1xf32>
    %41 = vector.broadcast %40 : vector<8x1xf32> to vector<8x32xf32>
    %42 = arith.mulf %41, %35 : vector<8x32xf32>
    %43 = arith.addf %34, %42 : vector<8x32xf32>
    %44 = vector.extract_strided_slice %16 {offsets = [0, 64], sizes = [8, 32], strides = [1, 1]} : vector<8x128xf32> to vector<8x32xf32>
    %45 = vector.extract_strided_slice %25 {offsets = [0, 2], sizes = [8, 1], strides = [1, 1]} : vector<8x8xf32> to vector<8x1xf32>
    %46 = vector.broadcast %45 : vector<8x1xf32> to vector<8x32xf32>
    %47 = arith.mulf %46, %44 : vector<8x32xf32>
    %48 = arith.addf %39, %47 : vector<8x32xf32>
    %49 = vector.extract_strided_slice %25 {offsets = [0, 6], sizes = [8, 1], strides = [1, 1]} : vector<8x8xf32> to vector<8x1xf32>
    %50 = vector.broadcast %49 : vector<8x1xf32> to vector<8x32xf32>
    %51 = arith.mulf %50, %44 : vector<8x32xf32>
    %52 = arith.addf %43, %51 : vector<8x32xf32>
    %53 = vector.extract_strided_slice %16 {offsets = [0, 96], sizes = [8, 32], strides = [1, 1]} : vector<8x128xf32> to vector<8x32xf32>
    %54 = vector.extract_strided_slice %25 {offsets = [0, 3], sizes = [8, 1], strides = [1, 1]} : vector<8x8xf32> to vector<8x1xf32>
    %55 = vector.broadcast %54 : vector<8x1xf32> to vector<8x32xf32>
    %56 = arith.mulf %55, %53 : vector<8x32xf32>
    %57 = arith.addf %48, %56 : vector<8x32xf32>
    %58 = vector.extract_strided_slice %25 {offsets = [0, 7], sizes = [8, 1], strides = [1, 1]} : vector<8x8xf32> to vector<8x1xf32>
    %59 = vector.broadcast %58 : vector<8x1xf32> to vector<8x32xf32>
    %60 = arith.mulf %59, %53 : vector<8x32xf32>
    %61 = arith.addf %52, %60 : vector<8x32xf32>
    %62 = tpu.concatenate %57, %61 in 1 : vector<8x32xf32>, vector<8x32xf32> -> vector<8x64xf32>
    %c0_16 = arith.constant 0 : index
    %c0_17 = arith.constant 0 : index
    %63 = vector.load %arg6[%c0_16, %c0_17] : memref<8x64xf32, #tpu.memory_space<vmem>>, vector<8x64xf32>
    tpu.vector_store %arg6[%c0_16, %c0_17], %62 {strides = array<i32>} : memref<8x64xf32, #tpu.memory_space<vmem>>, vector<8x64xf32>,
    return
  }
  func.func @transform_0(%arg0: i32) -> (i32, i32) {
    %c0_i32 = arith.constant 0 : i32
    %c0_i32_0 = arith.constant 0 : i32
    return %arg0, %c0_i32 : i32, i32
  }
  func.func @transform_1(%arg0: i32) -> (i32, i32) {
    %c0_i32 = arith.constant 0 : i32
    %c0_i32_0 = arith.constant 0 : i32
    %c0_i32_1 = arith.constant 0 : i32
    return %c0_i32, %c0_i32_0 : i32, i32
  }
  func.func @transform_2(%arg0: i32) -> (i32, i32) {
    %c0_i32 = arith.constant 0 : i32
    %c0_i32_0 = arith.constant 0 : i32
    %c0_i32_1 = arith.constant 0 : i32
    return %c0_i32, %c0_i32_0 : i32, i32
  }
  func.func @transform_3(%arg0: i32) -> (i32, i32) {
    %c0_i32 = arith.constant 0 : i32
    %c0_i32_0 = arith.constant 0 : i32
    %c0_i32_1 = arith.constant 0 : i32
    return %c0_i32, %c0_i32_0 : i32, i32
  }
  func.func @transform_4(%arg0: i32) -> (i32, i32) {
    %c0_i32 = arith.constant 0 : i32
    %c0_i32_0 = arith.constant 0 : i32
    %c0_i32_1 = arith.constant 0 : i32
    return %c0_i32, %c0_i32_0 : i32, i32
  }
  func.func @transform_5(%arg0: i32) -> (i32, i32) {
    %c0_i32 = arith.constant 0 : i32
    %c0_i32_0 = arith.constant 0 : i32
    return %arg0, %c0_i32 : i32, i32
  }
}

</mosaic_0001>

<bundles_post_ra>
// kernel: tpu_custom_call.1
= control target key start
LH: loop header
LB: loop body
LE: loop exit
PB: predicated region body
PF: predicated region fallthrough
CT: control target
= control target key end

     0   :  { %10 = vsyncpa [#allocation3], 0  ;;  %s1033_s0 = inlined_call_operand.vmem [shape: f32[16,8], index: 0, kind: input, shape index: {}]   ;;  %s1034_s1 = inlined_call_operand.vmem [shape: f32[8,16], index: 1, kind: input, shape index: {}]   ;;  %s1035_s2 = inlined_call_operand.vmem [shape: f32[16,8], index: 2, kind: input, shape index: {}]   ;;  %s1036_s3 = inlined_call_operand.vmem [shape: f32[8,128], index: 3, kind: input, shape index: {}]   ;;  %s1037_s4 = inlined_call_operand.vmem [shape: f32[8,32], index: 4, kind: input, shape index: {}]   ;;  %s1038_s5 = inlined_call_operand.hbm [shape: f32[16,64], index: 5, kind: output, shape index: {}]  }
   0x1   :  { %12 = vsyncpa [#allocation3 + $0x1], 0  ;;  %s901_s18 = smov 0   ;;  %s903_s19 = smov 0  }
   0x2   :  { %s905_s20 = smov 0   ;;  %s907_s21 = smov 0  }
   0x3 LB: > { %s922_s22 = sadd.s32 4294967295, %s855_s21   ;;  %s685_s23 = sadd.s32 4294967294, %s855_s21   ;;  %s855_s21 = sphi %s907_s21, %s1044_s21   ;;  %s851_s20 = sphi %s905_s20, %s1043_s20   ;;  %s847_s19 = sphi %s903_s19, %s1042_s19   ;;  %s843_s18 = sphi %s901_s18, %s1041_s18  }
   0x4   : > { %s926_s24 = sadd.s32 1, %s855_s21   ;;  %s135_s25 = sadd.s32 1, %s851_s20 }
   0x5   : > { %s132_s26 = ssub.s32 %s855_s21, %s926_s24  ;;  %p145_p0 = scmp.ne.s32.totalorder %s851_s20, %s847_s19 }
   0x6   : > { %p133_p1 = scmp.eq.s32.totalorder %s132_s26, 0  ;;  %p146_p2 = scmp.eq.s32.totalorder %s922_s22, 1 }
   0x7   : > { %p151_p3 = scmp.ne.s32.totalorder %s847_s19, %s843_s18  ;;  %p152_p4 = scmp.eq.s32.totalorder %s685_s23, 1 }
   0x8   : > { %s937_s27 = scalar_select %p133_p1, %s851_s20, %s135_s25  }
   0x9   : > { %p939_p5 = por %p146_p2, %p145_p0  ;;  %p943_p6 = por %p152_p4, %p151_p3 }
   0xa   : > { %p688_p7 = scmp.ge.s32.totalorder %s855_s21, 1  ;;  %p189_p8 = scmp.lt.s32.totalorder %s855_s21, 3 }
   0xc   : > { %p190_p9 = pnand %p688_p7, %p189_p8 }
   0xd   : > { %p216_p10 = scmp.lt.s32.totalorder (!%p190_p9), %s922_s22, 1  ;;  %s694_s26 = sshll.u32 (!%p190_p9), %s922_s22, 3 }
   0xe   : > { %193 = sbr.rel (%p190_p9) target bundleno = 1107 (0x453), region = 40  ;;  %s868_s9 = smov (!%p190_p9), 64  }
   0xf   : > { %s869_s10 = smov (!%p190_p9), 32   ;;  %s697_s13 = sshll.u32 (!%p190_p9), %s922_s22, 7 }
  0x10   : > { %s998_s23 = scalar_lea.hbm (!%p190_p9), %s1038_s5, %s697_s13 }
  0x13   : > { %v221_v0 = vld [vmem:[%s1034_s1] sm:$0xff]  ;;  %v857_v1 = vmov 0.0   ;;  %vm858_vm0 = vmmov 0   ;;  %s217_s7 = scalar_select %p216_p10, %s922_s22, 1  ;;  %vm222_vm1 = vcmask 64512   ;;  %vm297_vm2 = vcmask 130048  }
  0x14   : > { %709 = vmatprep.subr.mxu0 %v857_v1  ;;  %711 = vmatprep.mubr.msk.f32.mxu0 %vm858_vm0, %v857_v1  ;;  %v309_v12 = vld [vmem:[%s1036_s3] sm:$0xff]  ;;  %v452_v13 = vld [vmem:[%s1035_s2 + $0x8] sm:$0xff]  ;;  %v859_v21 = vmov 7   ;;  %v860_v22 = vmov 5   ;;  %v861_v27 = vmov 6   ;;  %v862_v29 = vmov 4  }
  0x15   : > { %710 = vmatpush3.msra.mxu0 %v221_v0  ;;  %714 = vmatprep.subr.mxu1 %v857_v1  ;;  %s690_s8 = sshll.u32 %s217_s7, 3  ;;  %v451_v14 = vld [vmem:[%s1035_s2] sm:$0xff]  ;;  %s454_s7 = scalar_lea.vmem %s1035_s2, %s694_s26  ;;  %v863_v31 = vmov 1   ;;  %v864_v32 = vmov 2   ;;  %v865_v33 = vmov 3   ;;  %v866_v34 = vmov 0  }
  0x16   : > { %716 = vmatprep.mubr.msk.f32.mxu1 %vm858_vm0, %v857_v1  ;;  %719 = vmatprep.subr.mxu0 %v857_v1  ;;  %s219_s11 = scalar_lea.vmem %s1033_s0, %s690_s8  ;;  %v380_v15 = vld [vmem:[%s1037_s4] sm:$0xff]  ;;  %s867_s8 = smov 96   ;;  %vm606_vm3 = vcmask 261120   ;;  %vm608_vm4 = vcmask 523264  }
  0x17   : > { %v220_v2 = vld [vmem:[%s219_s11] sm:$0xff]  ;;  %715 = vmatpush3.msra.mxu1 %v309_v12  ;;  %785 = vset.pattern.permute.xlu0 %v859_v21  ;;  %s213_s11 = sand.u32 1, %s847_s19   ;;  %s870_s22 = smov [#allocation2]  }
  0x18   : > { %712 = vmatmul.mubr.msk.f32.vlgmr.msra.gmra.mxu0 %vm222_vm1, %v220_v2  ;;  %717 = vmatmul.mubr.msk.f32.vlgmr.msra.gmra.mxu1 %vm222_vm1, %v220_v2  ;;  %v455_v23 = vld [vmem:[%s454_s7] sm:$0xff]  ;;  %s689_s12 = sshll.u32 %s213_s11, 3  ;;  %s611_s25 = scalar_lea.sflag [#allocation3], %s213_s11 }
  0x19   : > { %721 = vmatprep.mubr.msk.f32.mxu0 %vm858_vm0, %v857_v1  ;;  %724 = vmatprep.subr.mxu1 %v857_v1  ;;  %s215_s14 = scalar_lea.vmem [#allocation2], %s689_s12  ;;  %s799_s30 = sshll.u32 %s870_s22, 4  ;;  %s800_s30 = int_to_ptr.vmem [resolvable:$false] %s799_s30 }
  0x1a   : > { %725 = vmatpush3.msra.mxu1 %v452_v13  ;;  %728 = vmatprep.mubr.msk.f32.mxu1 %vm858_vm0, %v857_v1  ;;  %s624_s15 = sshll.u32 %s215_s14, 4  ;;  %s801_s6 = scalar_lea.vmem %s800_s30, 256  ;;  %s625_s15 = int_to_ptr.vmem [resolvable:$true] %s624_s15 }
  0x1b   : > { %726 = vmatprep.subr.mxu1 %v857_v1  ;;  %720 = vmatpush3.msra.mxu0 %v380_v15  ;;  %s795_s26 = scalar_lea.vmem %s625_s15, 128  ;;  %p802_p0 = scmp.lt.s32.totalorder %s625_s15, %s800_s30 }
  0x1c   : > { %727 = vmatpush3.msra.mxu1 %v451_v14  ;;  %722 = vmatmul.mubr.msk.f32.vlgmr.msra.gmra.mxu0 %vm222_vm1, %v220_v2  ;;  %p796_p11 = scmp.ne.s32.totalorder %s625_s15, %s795_s26  ;;  %p803_p1 = scmp.lt.s32.totalorder %s801_s6, %s795_s26 }
  0x1d   : > { %783 = vset.pattern.permute.xlu1 %v860_v22 }
  0x1e   : > { %p797_p12 = pnand %p796_p11, %p939_p5  ;;  %p804_p2 = por %p803_p1, %p802_p0 }
  0x20   : > { %p798_p13 = pneg %p797_p12 }
  0x22   : > { %p805_p3 = pnand %p804_p2, %p798_p13 }
  0xd8   : > { %v292_v3 = vpop.f32.mrf.mxu0  ;;  %v979_v19 = vpop.f32.mrf.mxu1 }
  0xd9   : > { %v296_v4 = vmax.f32 %v292_v3, 0.0 }
  0xda   : > { %v713_v5 = vpop.f32.mrf.mxu0  ;;  %v718_v20 = vpop.f32.mrf.mxu1 }
  0xdb   : > { %v298_v6 = vsel %vm297_vm2, %v296_v4, -inf }
  0xdc   : > { %299 = vmax.xlane.f32.xlu0 %v298_v6  ;;  %v447_v28 = vpop.f32.mrf.mxu0 }
  0xde   : > { %v723_v30 = vpop.f32.mrf.mxu0 }
 0x165   : > { %v300_v7 = vpop.xlane.xlu0 %299 }
 0x166   : > { %v301_v8 = vsub.f32 %v296_v4, %v300_v7 }
 0x168   : > { %v302_v9 = vmul.f32 1.442695, %v301_v8 }
 0x16a   : > { %791 = vpow2.f32 %v302_v9 }
 0x177   : > { %v792_v10 = vpop.eup %791 }
 0x178   : > { %v304_v11 = vsel %vm297_vm2, %v792_v10, 0.0 }
 0x179   : > { %305 = vadd.xlane.f32.xlu0 %v304_v11 }
 0x202   : > { %v306_v16 = vpop.xlane.xlu0 %305 }
 0x203   : > { %793 = vrcp.f32 %v306_v16 }
 0x210   : > { %v794_v17 = vpop.eup %793 }
 0x211   : > { %v308_v18 = vmul.f32 %v794_v17, %v792_v10 }
 0x213   : > { %729 = vmatmul.mubr.msk.f32.vlgmr.msra.gmra.mxu1 %vm297_vm2, %v308_v18 }
 0x2d3   : > { %v525_v24 = vpop.f32.mrf.mxu1 }
 0x2d4   : > { %v526_v25 = vadd.f32 %v525_v24, %v455_v23 }
 0x2d5   : > { %v730_v26 = vpop.f32.mrf.mxu1 }
 0x2d6   : > { %593 = vperm.xlu0 %785, %v526_v25   ;;  %553 = vperm.xlu1 %783, %v526_v25  }
 0x2da   : > { %784 = vset.pattern.permute.xlu1 %v861_v27 }
 0x2db   : > { %573 = vperm.xlu1 %784, %v526_v25  }
 0x2df   : > { %786 = vset.pattern.permute.xlu1 %v862_v29 }
 0x2e0   : > { %537 = vperm.xlu1 %786, %v526_v25  }
 0x2e4   : > { %787 = vset.pattern.permute.xlu1 %v863_v31 }
 0x2e5   : > { %543 = vperm.xlu1 %787, %v526_v25  }
 0x2e9   : > { %788 = vset.pattern.permute.xlu1 %v864_v32 }
 0x2ea   : > { %563 = vperm.xlu1 %788, %v526_v25  }
 0x2ee   : > { %789 = vset.pattern.permute.xlu1 %v865_v33 }
 0x2ef   : > { %583 = vperm.xlu1 %789, %v526_v25  }
 0x2f3   : > { %790 = vset.pattern.permute.xlu1 %v866_v34 }
 0x351   : > { %v554_v35 = vpop.permute.xlu1 %553  ;;  %v594_v39 = vpop.permute.xlu0 %593 }
 0x352   : > { %v556_v36 = vmul.f32 %v554_v35, %v979_v19  ;;  %v596_v40 = vmul.f32 %v594_v39, %v979_v19 }
 0x354   : > { %558 = vrot.lane.b32.xlu1 %v556_v36, %s867_s8 }
 0x356   : > { %v574_v37 = vpop.permute.xlu1 %573 }
 0x357   : > { %v576_v38 = vmul.f32 %v574_v37, %v979_v19 }
 0x359   : > { %578 = vrot.lane.b32.xlu1 %v576_v38, %s868_s9 }
 0x35b   : > { %v538_v41 = vpop.permute.xlu1 %537 }
 0x35c   : > { %v540_v48 = vmul.f32 %v538_v41, %v979_v19 }
 0x35d   : > { %598 = vrot.lane.b32.xlu1 %v596_v40, %s869_s10 }
 0x35e   : > { %v541_v50 = vadd.f32 %v540_v48, %v447_v28 }
 0x360   : > { %v544_v42 = vpop.permute.xlu1 %543 }
 0x361   : > { %531 = vperm.xlu1 %790, %v526_v25   ;;  %v546_v43 = vmul.f32 %v544_v42, %v979_v19 }
 0x365   : > { %548 = vrot.lane.b32.xlu1 %v546_v43, %s867_s8  ;;  %v564_v44 = vpop.permute.xlu1 %563 }
 0x366   : > { %v566_v45 = vmul.f32 %v564_v44, %v979_v19 }
 0x369   : > { %568 = vrot.lane.b32.xlu1 %v566_v45, %s868_s9 }
 0x36a   : > { %v584_v46 = vpop.permute.xlu1 %583 }
 0x36b   : > { %v586_v47 = vmul.f32 %v584_v46, %v979_v19 }
 0x36d   : > { %588 = vrot.lane.b32.xlu1 %v586_v47, %s869_s10 }
 0x3c6   : > { %v559_v49 = vpop.permute.xlu1 %558 }
 0x3c7   : > { %v561_v52 = vadd.f32 %v559_v49, %v541_v50 }
 0x3cb   : > { %v579_v51 = vpop.permute.xlu1 %578 }
 0x3cc   : > { %v581_v53 = vadd.f32 %v579_v51, %v561_v52 }
 0x3cf   : > { %v599_v54 = vpop.permute.xlu1 %598 }
 0x3d0   : > { %v601_v55 = vadd.f32 %v599_v54, %v581_v53 }
 0x3d2   : > { %603 = vrot.lane.b32.xlu0 %v601_v55, %s869_s10 }
 0x3dc   : > { %v532_v56 = vpop.permute.xlu1 %531 }
 0x3dd   : > { %v534_v58 = vmul.f32 %v532_v56, %v979_v19 }
 0x3df   : > { %v535_v60 = vadd.f32 %v534_v58, %v447_v28 }
 0x3e0   : > { %v549_v57 = vpop.permute.xlu1 %548 }
 0x3e1   : > { %v551_v61 = vadd.f32 %v549_v57, %v535_v60 }
 0x3e4   : > { %v569_v59 = vpop.permute.xlu1 %568 }
 0x3e5   : > { %v571_v63 = vadd.f32 %v569_v59, %v551_v61 }
 0x3e8   : > { %v589_v62 = vpop.permute.xlu1 %588 }
 0x3e9   : > { %v591_v0 = vadd.f32 %v589_v62, %v571_v63 }
 0x444   : > { %v604_v1 = vpop.permute.xlu0 %603 }
 0x445   : > { %v607_v2 = vsel %vm606_vm3, %v591_v0, %v604_v1 }
 0x446   : > { %609 = vst.msk [vmem:[%s215_s14] sm:$0xff] %vm608_vm4, %v607_v2 }
 0x447   : > { %808 = shalt.err (!%p805_p3)
}
 0x448   : > { %s809_s7 = scalar_lea.hbm %s998_s23, 128  ;;  %s813_s10 = scalar_lea.hbm %s1038_s5, 256 }
 0x449   : > { %p810_p4 = scmp.ne.s32.totalorder %s998_s23, %s809_s7  ;;  %p814_p9 = scmp.lt.s32.totalorder %s998_s23, %s1038_s5 }
 0x44a   : > { %p815_p10 = scmp.lt.s32.totalorder %s813_s10, %s809_s7 }
 0x44b   : > { %p811_p7 = pnand %p810_p4, %p939_p5 }
 0x44c   : > { %p816_p11 = por %p815_p10, %p814_p9 }
 0x44d   : > { %p812_p8 = pneg %p811_p7 }
 0x44f   : > { %p817_p12 = pnand %p816_p11, %p812_p8 }
 0x451   : > { %820 = shalt.err (!%p817_p12)
}
 0x452   : > { %731 = dma.vmem_to_hbm [thread:$0]  (%p939_p5), %s625_s15, 128, %s998_s23, %s611_s25  }
 0x453 PF: > { %p737_p13 = scmp.ge.s32.totalorder %s855_s21, 2  ;;  %s636_s13 = sand.u32 1, %s843_s18  }
 0x454   : > { %s637_s14 = scalar_lea.sflag [#allocation3], %s636_s13 }
 0x455   : > { %p734_p0 = pnand %p737_p13, %p943_p6 }
 0x457   : > { %p735_p1 = pneg %p734_p0 }
 0x459   : > { %838 = dma.done.wait (%p735_p1), %s637_s14, 128  }
 0x45a   : > { %840 = vsyncadd (%p735_p1), %s637_s14, 4294967168  ;;  %p15_p2 = scmp.ge.s32.totalorder %s926_s24, 4   ;;  %s1041_s18 = smov %s847_s19 }
 0x45b   : > { %s1042_s19 = smov %s851_s20  ;;  %s1043_s20 = smov %s937_s27 }
 0x45c   : > { %s1044_s21 = smov %s926_s24  ;;  %17 = sbr.rel (!%p15_p2) target bundleno = 3 (0x3), region = 76 }
 0x461   :  { %642 = vsyncpa [#allocation3], 1 }
 0x462   :  { %644 = vsyncpa [#allocation3 + $0x1], 1 }

</bundles_post_ra>
